<compile_context>
chip_gen: v7x
topology: tpu7x:2x2x1
jax: 0.10.0
libtpu: 0.0.40
codegen_flags: <defaults>
</compile_context>

<pallas_src>
import jax
import jax.numpy as jnp
from jax.experimental import pallas as pl
from jax.experimental.pallas import tpu as pltpu

H1, H2, H3 = 512, 256, 128   # hidden widths of the MLP
_SUBLANE = 8
_MAX_TILE_B = 4096           # keeps the tile footprint well under v7x's 64 MiB VMEM


def _round_up(x, m):
    return ((x + m - 1) // m) * m


def _default_bf16_epilogue():
    """bf16 VPU path exists on v6e/v7x; keep f32 elementwise on v5e and older."""
    try:
        kind = jax.devices()[0].device_kind.lower()
    except Exception:
        return False
    return not any(t in kind for t in ("v2", "v3", "v4", "v5"))


def _make_kernel(bf16_epilogue):
    def kernel(x_ref,
               w1_ref, b1_ref,
               w2_ref, b2_ref,
               w3_ref, b3_ref,
               w4_ref, b4_ref,
               o_ref):
        def act(acc, b_ref):
            # bias add + ReLU + downcast; bf16 on v6e/v7x, f32 on v5e.
            if bf16_epilogue:
                return jnp.maximum(acc.astype(jnp.bfloat16) + b_ref[...], 0)
            return jnp.maximum(acc + b_ref[...], 0.0).astype(jnp.bfloat16)

        # Layer 1: Linear(state_dim, 512) + ReLU (bf16 cast done in-kernel).
        x = x_ref[...].astype(jnp.bfloat16)
        h = act(jnp.dot(x, w1_ref[...], preferred_element_type=jnp.float32), b1_ref)
        # Layer 2: Linear(512, 256) + ReLU
        h = act(jnp.dot(h, w2_ref[...], preferred_element_type=jnp.float32), b2_ref)
        # Dropout(0.3) -> identity in eval mode.
        # TODO(synk): training-mode dropout would need pltpu.prng_seed +
        #             pltpu.stateful_bernoulli; omitted for inference forward.
        # Layer 3: Linear(256, 128) + ReLU
        h = act(jnp.dot(h, w3_ref[...], preferred_element_type=jnp.float32), b3_ref)
        # Layer 4: Linear(128, action_dim), bias in f32, f32 output.
        out = jnp.dot(h, w4_ref[...], preferred_element_type=jnp.float32)
        o_ref[...] = (out + b4_ref[...]).astype(o_ref.dtype)
    return kernel


def prepare_params(params, bf16_epilogue=None):
    """One-time parameter prep (hoisted off the per-forward hot path).

    Casts weights to bf16 (MXU operands) and hidden-layer biases to the
    epilogue dtype; the final bias stays f32.
    """
    if bf16_epilogue is None:
        bf16_epilogue = _default_bf16_epilogue()
    ep_dtype = jnp.bfloat16 if bf16_epilogue else jnp.float32
    (w1, b1), (w2, b2), (w3, b3), (w4, b4) = params
    prepped = (
        w1.astype(jnp.bfloat16), b1.reshape(1, -1).astype(ep_dtype),
        w2.astype(jnp.bfloat16), b2.reshape(1, -1).astype(ep_dtype),
        w3.astype(jnp.bfloat16), b3.reshape(1, -1).astype(ep_dtype),
        w4.astype(jnp.bfloat16), b4.reshape(1, -1).astype(jnp.float32),
    )
    return prepped, bf16_epilogue


def _choose_tile(B, tile_b):
    tile_b = max(_SUBLANE, min(int(tile_b), _MAX_TILE_B))
    tile_b = min(tile_b, _round_up(B, _SUBLANE))
    # v7x megacore: ensure >=2 grid steps when there is enough batch to split.
    if B >= 16 and _round_up(B, _SUBLANE) <= tile_b:
        tile_b = _round_up(pl.cdiv(B, 2), _SUBLANE)
    n_tiles = pl.cdiv(B, tile_b)
    # Rebalance so b_pad overshoot stays small (avoid near-2x padding).
    tile_b = _round_up(pl.cdiv(B, n_tiles), _SUBLANE)
    return tile_b, int(n_tiles)


def _vmem_budget(tile_b, state_dim, action_dim, bf16_epilogue):
    """Derive the scoped-VMEM request from the actual tile footprint."""
    w_bytes = 2 * 2 * (state_dim * H1 + H1 * H2 + H2 * H3 + H3 * action_dim)
    b_bytes = 2 * 4 * (H1 + H2 + H3 + action_dim)
    io_bytes = 2 * tile_b * 4 * (state_dim + action_dim)      # double-buffered x/out
    ew = 2 if bf16_epilogue else 4
    act_bytes = tile_b * (H1 + H2 + H3) * (4 + ew)            # f32 accum + downcast
    total = w_bytes + b_bytes + io_bytes + act_bytes
    budget = int(total * 1.5) + (4 << 20)                     # compiler headroom
    return max(16 << 20, min(budget, 48 << 20))


def nn_forward(x, prepped, bf16_epilogue, *, tile_b=1024):
    """Fused MLP forward (eval mode). x: (B, state_dim) float32, unpadded."""
    w1, b1, w2, b2, w3, b3, w4, b4 = prepped
    B, state_dim = x.shape
    action_dim = w4.shape[1]

    tile_b, n_tiles = _choose_tile(B, tile_b)
    b_pad = n_tiles * tile_b

    # Only the (cheap) batch-row pad happens at call time, and only when needed.
    x_in = x if b_pad == B else jnp.pad(x, ((0, b_pad - B), (0, 0)))

    def resident(shape):
        # Constant index_map: block is fetched once and stays in VMEM.
        return pl.BlockSpec(shape, lambda i: (0, 0))

    flops = 2 * b_pad * (state_dim * H1 + H1 * H2 + H2 * H3 + H3 * action_dim)
    bytes_accessed = (
        4 * b_pad * state_dim                                     # f32 input
        + 2 * (w1.size + w2.size + w3.size + w4.size)             # bf16 weights
        + 4 * (H1 + H2 + H3 + action_dim)                         # biases
        + 4 * b_pad * action_dim)                                 # f32 output

    out = pl.pallas_call(
        _make_kernel(bf16_epilogue),
        out_shape=jax.ShapeDtypeStruct((b_pad, action_dim), jnp.float32),
        grid=(n_tiles,),
        in_specs=[
            pl.BlockSpec((tile_b, state_dim), lambda i: (i, 0)),  # activations
            resident((state_dim, H1)), resident((1, H1)),
            resident((H1, H2)),        resident((1, H2)),
            resident((H2, H3)),        resident((1, H3)),
            resident((H3, action_dim)), resident((1, action_dim)),
        ],
        out_specs=pl.BlockSpec((tile_b, action_dim), lambda i: (i, 0)),
        compiler_params=pltpu.CompilerParams(
            dimension_semantics=("parallel",),
            vmem_limit_bytes=_vmem_budget(tile_b, state_dim, action_dim,
                                          bf16_epilogue),
        ),
        cost_estimate=pl.CostEstimate(
            flops=int(flops), transcendentals=0,
            bytes_accessed=int(bytes_accessed)),
    )(x_in, w1, b1, w2, b2, w3, b3, w4, b4)

    return out if b_pad == B else out[:B]


def init_params(key, state_dim, action_dim):
    """Deterministic init mimicking _init_weights: W ~ N(0, 0.01), b ~ U(-0.1, 0.1)."""
    dims = [(state_dim, H1), (H1, H2), (H2, H3), (H3, action_dim)]
    params = []
    for (din, dout) in dims:
        key, kw, kb = jax.random.split(key, 3)
        w = (0.01 * jax.random.normal(kw, (din, dout))).astype(jnp.float32)
        b = jax.random.uniform(kb, (1, dout), minval=-0.1, maxval=0.1
                               ).astype(jnp.float32)
        params.append((w, b))
    return params


def _ref_forward(x, params, bf16_epilogue):
    """Pure-JAX reference mirroring the kernel numerics."""
    h = x.astype(jnp.bfloat16)
    for i, (w, b) in enumerate(params):
        acc = jnp.dot(h, w.astype(jnp.bfloat16),
                      preferred_element_type=jnp.float32)
        b_row = b.reshape(1, -1)
        if i == 3:
            return acc + b_row.astype(jnp.float32)
        if bf16_epilogue:
            h = jnp.maximum(acc.astype(jnp.bfloat16)
                            + b_row.astype(jnp.bfloat16), 0)
        else:
            h = jnp.maximum(acc + b_row, 0.0).astype(jnp.bfloat16)
    return acc


if __name__ == "__main__":
    key = jax.random.PRNGKey(0)
    batch, state_dim, action_dim = 8, 32, 16

    kx, kp = jax.random.split(key)
    x = jax.random.normal(kx, (batch, state_dim), dtype=jnp.float32)
    params = init_params(kp, state_dim, action_dim)

    prepped, bf16_ep = prepare_params(params)   # one-time prep (off the hot path)
    out = nn_forward(x, prepped, bf16_ep)
    jax.block_until_ready(out)

    ref = _ref_forward(x, params, bf16_ep)
    assert out.shape == (batch, action_dim)
    assert jnp.allclose(out, ref, atol=2e-3, rtol=2e-2), (
        float(jnp.max(jnp.abs(out - ref))))

    print("KERNEL_OK")
</pallas_src>

<mosaic_0001>
module attributes {stable_mosaic.version = 11 : i64} {
  func.func @kernel(%arg0: i32, %arg1: memref<8x32xf32, #tpu.memory_space<vmem>>, %arg2: memref<32x512xbf16, #tpu.memory_space<vmem>>, %arg3: memref<1x512xbf16, #tpu.memory_space<vmem>>, %arg4: memref<512x256xbf16, #tpu.memory_space<vmem>>, %arg5: memref<1x256xbf16, #tpu.memory_space<vmem>>, %arg6: memref<256x128xbf16, #tpu.memory_space<vmem>>, %arg7: memref<1x128xbf16, #tpu.memory_space<vmem>>, %arg8: memref<128x16xbf16, #tpu.memory_space<vmem>>, %arg9: memref<1x16xf32, #tpu.memory_space<vmem>>, %arg10: memref<8x16xf32, #tpu.memory_space<vmem>>) attributes {dimension_semantics = [#tpu.dimension_semantics<parallel>], iteration_bounds = array<i64: 1>, scalar_prefetch = 0 : i64, scratch_operands = 0 : i64, tpu.core_type = #tpu.core_type<tc>, window_params = [{transform_indices = @transform_0, window_bounds = array<i64: 8, 32>}, {pipeline_mode = #tpu.pipeline_mode<synchronous>, transform_indices = @transform_1, window_bounds = array<i64: 32, 512>}, {pipeline_mode = #tpu.pipeline_mode<synchronous>, transform_indices = @transform_2, window_bounds = array<i64: 1, 512>}, {pipeline_mode = #tpu.pipeline_mode<synchronous>, transform_indices = @transform_3, window_bounds = array<i64: 512, 256>}, {pipeline_mode = #tpu.pipeline_mode<synchronous>, transform_indices = @transform_4, window_bounds = array<i64: 1, 256>}, {pipeline_mode = #tpu.pipeline_mode<synchronous>, transform_indices = @transform_5, window_bounds = array<i64: 256, 128>}, {pipeline_mode = #tpu.pipeline_mode<synchronous>, transform_indices = @transform_6, window_bounds = array<i64: 1, 128>}, {pipeline_mode = #tpu.pipeline_mode<synchronous>, transform_indices = @transform_7, window_bounds = array<i64: 128, 16>}, {pipeline_mode = #tpu.pipeline_mode<synchronous>, transform_indices = @transform_8, window_bounds = array<i64: 1, 16>}, {transform_indices = @transform_9, window_bounds = array<i64: 8, 16>}]} {
    %c0 = arith.constant 0 : index
    %c0_0 = arith.constant 0 : index
    %0 = vector.load %arg1[%c0, %c0_0] : memref<8x32xf32, #tpu.memory_space<vmem>>, vector<8x32xf32>
    %1 = arith.truncf %0 : vector<8x32xf32> to vector<8x32xbf16>
    %c0_1 = arith.constant 0 : index
    %c0_2 = arith.constant 0 : index
    %2 = vector.load %arg2[%c0_1, %c0_2] : memref<32x512xbf16, #tpu.memory_space<vmem>>, vector<32x512xbf16>
    %cst = arith.constant dense<0.000000e+00> : vector<8x512xf32>
    %3 = tpu.matmul %1, %2, %cst {dimension_numbers = #tpu.dot_dimension_numbers<[1], [0], [0], [1], [0, 0, 1, 1], [], []>} : vector<8x32xbf16>, vector<32x512xbf16>, vector<8x512xf32> -> vector<8x512xf32>
    %4 = arith.truncf %3 : vector<8x512xf32> to vector<8x512xbf16>
    %c0_3 = arith.constant 0 : index
    %c0_4 = arith.constant 0 : index
    %5 = vector.load %arg3[%c0_3, %c0_4] : memref<1x512xbf16, #tpu.memory_space<vmem>>, vector<1x512xbf16>
    %6 = vector.broadcast %5 : vector<1x512xbf16> to vector<8x512xbf16>
    %7 = arith.addf %4, %6 : vector<8x512xbf16>
    %cst_5 = arith.constant 0.000000e+00 : bf16
    %8 = vector.broadcast %cst_5 : bf16 to vector<8x512xbf16>
    %9 = arith.maximumf %7, %8 : vector<8x512xbf16>
    %c0_6 = arith.constant 0 : index
    %c0_7 = arith.constant 0 : index
    %10 = vector.load %arg4[%c0_6, %c0_7] : memref<512x256xbf16, #tpu.memory_space<vmem>>, vector<512x256xbf16>
    %cst_8 = arith.constant dense<0.000000e+00> : vector<8x256xf32>
    %11 = tpu.matmul %9, %10, %cst_8 {dimension_numbers = #tpu.dot_dimension_numbers<[1], [0], [0], [1], [0, 0, 1, 1], [], []>} : vector<8x512xbf16>, vector<512x256xbf16>, vector<8x256xf32> -> vector<8x256xf32>
    %12 = arith.truncf %11 : vector<8x256xf32> to vector<8x256xbf16>
    %c0_9 = arith.constant 0 : index
    %c0_10 = arith.constant 0 : index
    %13 = vector.load %arg5[%c0_9, %c0_10] : memref<1x256xbf16, #tpu.memory_space<vmem>>, vector<1x256xbf16>
    %14 = vector.broadcast %13 : vector<1x256xbf16> to vector<8x256xbf16>
    %15 = arith.addf %12, %14 : vector<8x256xbf16>
    %cst_11 = arith.constant 0.000000e+00 : bf16
    %16 = vector.broadcast %cst_11 : bf16 to vector<8x256xbf16>
    %17 = arith.maximumf %15, %16 : vector<8x256xbf16>
    %c0_12 = arith.constant 0 : index
    %c0_13 = arith.constant 0 : index
    %18 = vector.load %arg6[%c0_12, %c0_13] : memref<256x128xbf16, #tpu.memory_space<vmem>>, vector<256x128xbf16>
    %cst_14 = arith.constant dense<0.000000e+00> : vector<8x128xf32>
    %19 = tpu.matmul %17, %18, %cst_14 {dimension_numbers = #tpu.dot_dimension_numbers<[1], [0], [0], [1], [0, 0, 1, 1], [], []>} : vector<8x256xbf16>, vector<256x128xbf16>, vector<8x128xf32> -> vector<8x128xf32>
    %20 = arith.truncf %19 : vector<8x128xf32> to vector<8x128xbf16>
    %c0_15 = arith.constant 0 : index
    %c0_16 = arith.constant 0 : index
    %21 = vector.load %arg7[%c0_15, %c0_16] : memref<1x128xbf16, #tpu.memory_space<vmem>>, vector<1x128xbf16>
    %22 = vector.broadcast %21 : vector<1x128xbf16> to vector<8x128xbf16>
    %23 = arith.addf %20, %22 : vector<8x128xbf16>
    %cst_17 = arith.constant 0.000000e+00 : bf16
    %24 = vector.broadcast %cst_17 : bf16 to vector<8x128xbf16>
    %25 = arith.maximumf %23, %24 : vector<8x128xbf16>
    %c0_18 = arith.constant 0 : index
    %c0_19 = arith.constant 0 : index
    %26 = vector.load %arg8[%c0_18, %c0_19] : memref<128x16xbf16, #tpu.memory_space<vmem>>, vector<128x16xbf16>
    %cst_20 = arith.constant dense<0.000000e+00> : vector<8x16xf32>
    %27 = tpu.matmul %25, %26, %cst_20 {dimension_numbers = #tpu.dot_dimension_numbers<[1], [0], [0], [1], [0, 0, 1, 1], [], []>} : vector<8x128xbf16>, vector<128x16xbf16>, vector<8x16xf32> -> vector<8x16xf32>
    %c0_21 = arith.constant 0 : index
    %c0_22 = arith.constant 0 : index
    %28 = vector.load %arg9[%c0_21, %c0_22] : memref<1x16xf32, #tpu.memory_space<vmem>>, vector<1x16xf32>
    %29 = vector.broadcast %28 : vector<1x16xf32> to vector<8x16xf32>
    %30 = arith.addf %27, %29 : vector<8x16xf32>
    %c0_23 = arith.constant 0 : index
    %c0_24 = arith.constant 0 : index
    %31 = vector.load %arg10[%c0_23, %c0_24] : memref<8x16xf32, #tpu.memory_space<vmem>>, vector<8x16xf32>
    tpu.vector_store %arg10[%c0_23, %c0_24], %30 {strides = array<i32>} : memref<8x16xf32, #tpu.memory_space<vmem>>, vector<8x16xf32>,
    return
  }
  func.func @transform_0(%arg0: i32) -> (i32, i32) {
    %c0_i32 = arith.constant 0 : i32
    %c0_i32_0 = arith.constant 0 : i32
    return %arg0, %c0_i32 : i32, i32
  }
  func.func @transform_1(%arg0: i32) -> (i32, i32) {
    %c0_i32 = arith.constant 0 : i32
    %c0_i32_0 = arith.constant 0 : i32
    %c0_i32_1 = arith.constant 0 : i32
    return %c0_i32, %c0_i32_0 : i32, i32
  }
  func.func @transform_2(%arg0: i32) -> (i32, i32) {
    %c0_i32 = arith.constant 0 : i32
    %c0_i32_0 = arith.constant 0 : i32
    %c0_i32_1 = arith.constant 0 : i32
    return %c0_i32, %c0_i32_0 : i32, i32
  }
  func.func @transform_3(%arg0: i32) -> (i32, i32) {
    %c0_i32 = arith.constant 0 : i32
    %c0_i32_0 = arith.constant 0 : i32
    %c0_i32_1 = arith.constant 0 : i32
    return %c0_i32, %c0_i32_0 : i32, i32
  }
  func.func @transform_4(%arg0: i32) -> (i32, i32) {
    %c0_i32 = arith.constant 0 : i32
    %c0_i32_0 = arith.constant 0 : i32
    %c0_i32_1 = arith.constant 0 : i32
    return %c0_i32, %c0_i32_0 : i32, i32
  }
  func.func @transform_5(%arg0: i32) -> (i32, i32) {
    %c0_i32 = arith.constant 0 : i32
    %c0_i32_0 = arith.constant 0 : i32
    %c0_i32_1 = arith.constant 0 : i32
    return %c0_i32, %c0_i32_0 : i32, i32
  }
  func.func @transform_6(%arg0: i32) -> (i32, i32) {
    %c0_i32 = arith.constant 0 : i32
    %c0_i32_0 = arith.constant 0 : i32
    %c0_i32_1 = arith.constant 0 : i32
    return %c0_i32, %c0_i32_0 : i32, i32
  }
  func.func @transform_7(%arg0: i32) -> (i32, i32) {
    %c0_i32 = arith.constant 0 : i32
    %c0_i32_0 = arith.constant 0 : i32
    %c0_i32_1 = arith.constant 0 : i32
    return %c0_i32, %c0_i32_0 : i32, i32
  }
  func.func @transform_8(%arg0: i32) -> (i32, i32) {
    %c0_i32 = arith.constant 0 : i32
    %c0_i32_0 = arith.constant 0 : i32
    %c0_i32_1 = arith.constant 0 : i32
    return %c0_i32, %c0_i32_0 : i32, i32
  }
  func.func @transform_9(%arg0: i32) -> (i32, i32) {
    %c0_i32 = arith.constant 0 : i32
    %c0_i32_0 = arith.constant 0 : i32
    return %arg0, %c0_i32 : i32, i32
  }
}

</mosaic_0001>

<bundles_post_ra>
// kernel: tpu_custom_call.1
= control target key start
LH: loop header
LB: loop body
LE: loop exit
PB: predicated region body
PF: predicated region fallthrough
CT: control target
= control target key end

     0   :  { %14 = vsyncpa [#allocation3], 0  ;;  %s1649_s0 = inlined_call_operand.vmem [shape: f32[8,32], index: 0, kind: input, shape index: {}]   ;;  %s1650_s1 = inlined_call_operand.vmem [shape: bf16[32,512], index: 1, kind: input, shape index: {}]   ;;  %s1651_s2 = inlined_call_operand.vmem [shape: bf16[1,512], index: 2, kind: input, shape index: {}]   ;;  %s1652_s3 = inlined_call_operand.hbm [shape: bf16[512,256], index: 3, kind: input, shape index: {}]   ;;  %s1653_s4 = inlined_call_operand.vmem [shape: bf16[1,256], index: 4, kind: input, shape index: {}]   ;;  %s1654_s5 = inlined_call_operand.hbm [shape: bf16[256,128], index: 5, kind: input, shape index: {}]   ;;  %s1655_s6 = inlined_call_operand.vmem [shape: bf16[1,128], index: 6, kind: input, shape index: {}]   ;;  %s1656_s7 = inlined_call_operand.vmem [shape: bf16[128,16], index: 7, kind: input, shape index: {}]   ;;  %s1657_s8 = inlined_call_operand.vmem [shape: f32[1,16], index: 8, kind: input, shape index: {}]   ;;  %s1658_s9 = inlined_call_operand.hbm [shape: f32[8,16], index: 9, kind: output, shape index: {}]  }
   0x1   :  { %15 = vsyncpa [#allocation6], 0 }
   0x2   :  { %16 = vsyncpa [#allocation4], 0  ;;  %s1453_s30 = smov [#allocation2]   ;;  %s1381_s13 = scalar_lea.hbm %s1652_s3, 8192 }
   0x3   :  { %s28_s10 = sshll.u32 %s1453_s30, 4  ;;  %p1382_p0 = scmp.ne.s32.totalorder %s1652_s3, %s1381_s13  ;;  %s29_s10 = int_to_ptr.vmem [resolvable:$true] %s28_s10 }
   0x4   :  { %p1385_p1 = scmp.lt.u32.totalorder %s1381_s13, %s1652_s3 }
   0x6   :  { %p1387_p2 = pnand %p1385_p1, %p1382_p0 }
   0x8   :  { %1390 = shalt.err (!%p1387_p2)
}
   0x9   :  { %s1391_s18 = scalar_lea.vmem %s29_s10, 8192  ;;  %p1396_p4 = scmp.lt.s32.totalorder %s29_s10, %s29_s10 }
   0xa   :  { %p1392_p3 = scmp.ne.s32.totalorder %s29_s10, %s1391_s18  ;;  %p1397_p5 = scmp.lt.s32.totalorder %s1391_s18, %s1391_s18 }
   0xc   :  { %p1398_p6 = por %p1397_p5, %p1396_p4 }
   0xe   :  { %p1399_p7 = pnand %p1398_p6, %p1392_p3 }
  0x10   :  { %1402 = shalt.err (!%p1399_p7)
}
  0x11   :  { %s1454_s19 = smov 128   ;;  %s1455_s20 = smov 8  }
  0x12   :  { %34 = dma.hbm_to_vmem [thread:$0]  %s1652_s3, 8192, %s29_s10, [#allocation3], %s1454_s19, %s1454_s19, %s1455_s20  }
  0x13   :  { %s1456_s23 = smov [#allocation5]   ;;  %s1403_s27 = scalar_lea.hbm %s1654_s5, 2048 }
  0x14   :  { %s42_s24 = sshll.u32 %s1456_s23, 4  ;;  %p1404_p8 = scmp.ne.s32.totalorder %s1654_s5, %s1403_s27  ;;  %s43_s24 = int_to_ptr.vmem [resolvable:$true] %s42_s24 }
  0x15   :  { %p1407_p9 = scmp.lt.u32.totalorder %s1403_s27, %s1654_s5 }
  0x17   :  { %p1409_p10 = pnand %p1407_p9, %p1404_p8 }
  0x19   :  { %1412 = shalt.err (!%p1409_p10)
}
  0x1a   :  { %s1413_s12 = scalar_lea.vmem %s43_s24, 2048  ;;  %p1418_p12 = scmp.lt.s32.totalorder %s43_s24, %s43_s24 }
  0x1b   :  { %p1414_p11 = scmp.ne.s32.totalorder %s43_s24, %s1413_s12  ;;  %p1419_p13 = scmp.lt.s32.totalorder %s1413_s12, %s1413_s12 }
  0x1d   :  { %p1420_p0 = por %p1419_p13, %p1418_p12 }
  0x1f   :  { %p1421_p1 = pnand %p1420_p0, %p1414_p11 }
  0x21   :  { %1424 = shalt.err (!%p1421_p1)
}
  0x22   :  { %s1457_s3 = smov 64   ;;  %s1458_s10 = smov 4  }
  0x23   :  { %48 = dma.hbm_to_vmem [thread:$0]  %s1654_s5, 2048, %s43_s24, [#allocation6], %s1457_s3, %s1457_s3, %s1458_s10  }
  0x24   :  { %1447 = dma.done.wait [#allocation3], 8192  }
  0x25   :  { %1448 = vsyncadd [#allocation3], 4294959104 }
  0x26   :  { %1449 = dma.done.wait [#allocation6], 2048  }
  0x27   :  { %1450 = vsyncadd [#allocation6], 4294965248  ;;  %v1459_v0 = vmov 0   ;;  %v1249_v1 = vld [vmem:[%s1650_s1 + $0x4] ss:$16 sps:$4 sm:$0xff]   ;;  %vm112_vm0 = vcmask 261120   ;;  %v215_v58 = vlaneseq }
  0x28   :  { %148 = vmatprep.mubr.bf16.mxu1 %v1459_v0  ;;  %v1251_v2 = vld [vmem:[%s1650_s1] ss:$16 sps:$4 sm:$0xff]   ;;  %116 = vmatprep.subr.bf16.mxu1 %v1249_v1  ;;  %v1252_v3 = vld [vmem:[%s1650_s1 + $0x24] ss:$16 sps:$4 sm:$0xff]   ;;  %v1257_v6 = vld [vmem:[%s1650_s1 + $0xc] ss:$16 sps:$4 sm:$0xff]  }
  0x29   :  { %v1254_v4 = vld [vmem:[%s1650_s1 + $0x20] ss:$16 sps:$4 sm:$0xff]   ;;  %117 = vmatpush1.bf16.msra.mxu1 %v1251_v2  ;;  %v1255_v7 = vld [vmem:[%s1650_s1 + $0x8] ss:$16 sps:$4 sm:$0xff]   ;;  %v1261_v9 = vld [vmem:[#allocation2 + $0x4] ss:$8 sps:$4 sm:$0xff]  }
  0x2a   :  { %v62_v5 = vld [vmem:[%s1649_s0] sm:$0xff]  ;;  %118 = vmatprep.subr.bf16.mxu1 %v1252_v3  ;;  %v1264_v11 = vld [vmem:[#allocation2 + $0x14] ss:$8 sps:$4 sm:$0xff]   ;;  %648 = vmatprep.subr.bf16.mxu0 %v1261_v9  ;;  %v1266_v13 = vld [vmem:[#allocation2 + $0x10] ss:$8 sps:$4 sm:$0xff]   ;;  %v216_v60 = vshrl.u32 %v215_v58, 7 }
  0x2b   :  { %v63_v8 = vpack.c.bf16 %v62_v5, %v62_v5  ;;  %v1263_v10 = vld [vmem:[#allocation2] ss:$8 sps:$4 sm:$0xff]   ;;  %v1260_v12 = vld [vmem:[%s1650_s1 + $0x2c] ss:$16 sps:$4 sm:$0xff]   ;;  %v1272_v18 = vld [vmem:[#allocation2 + $0x30] ss:$8 sps:$4 sm:$0xff]  }
  0x2c   :  { %649 = vmatpush1.bf16.msra.mxu0 %v1263_v10  ;;  %v1267_v14 = vld [vmem:[#allocation2 + $0x24] ss:$8 sps:$4 sm:$0xff]   ;;  %v1258_v15 = vld [vmem:[%s1650_s1 + $0x28] ss:$16 sps:$4 sm:$0xff]   ;;  %v1270_v17 = vld [vmem:[#allocation2 + $0x34] ss:$8 sps:$4 sm:$0xff]  }
  0x2d   :  { %119 = vmatpush1.bf16.msra.mxu1 %v1254_v4  ;;  %650 = vmatprep.subr.bf16.mxu0 %v1264_v11  ;;  %v1269_v16 = vld [vmem:[#allocation2 + $0x20] ss:$8 sps:$4 sm:$0xff]   ;;  %v1273_v19 = vld [vmem:[#allocation2 + $0x44] ss:$8 sps:$4 sm:$0xff]   ;;  %v1276_v21 = vld [vmem:[#allocation2 + $0x54] ss:$8 sps:$4 sm:$0xff]  }
  0x2e   :  { %157 = vmatprep.subr.bf16.mxu1 %v1257_v6  ;;  %v1275_v20 = vld [vmem:[#allocation2 + $0x40] ss:$8 sps:$4 sm:$0xff]   ;;  %v1278_v22 = vld [vmem:[#allocation2 + $0x50] ss:$8 sps:$4 sm:$0xff]   ;;  %v1279_v23 = vld [vmem:[#allocation2 + $0x64] ss:$8 sps:$4 sm:$0xff]  }
  0x2f   :  { %v1281_v24 = vld [vmem:[#allocation2 + $0x60] ss:$8 sps:$4 sm:$0xff]   ;;  %v1282_v25 = vld [vmem:[#allocation2 + $0x74] ss:$8 sps:$4 sm:$0xff]   ;;  %v1284_v26 = vld [vmem:[#allocation2 + $0x70] ss:$8 sps:$4 sm:$0xff]  }
  0x30   :  { %1090 = vmatmul.mubr.msk.bf16.vlgmr.msra.gmra.mrb[0].mxu1 %vm112_vm0, %v63_v8  ;;  %651 = vmatpush1.bf16.msra.mxu0 %v1266_v13  ;;  %v1285_v27 = vld [vmem:[#allocation2 + $0x84] ss:$8 sps:$4 sm:$0xff]   ;;  %v1287_v28 = vld [vmem:[#allocation2 + $0x80] ss:$8 sps:$4 sm:$0xff]   ;;  %v1288_v29 = vld [vmem:[#allocation2 + $0x94] ss:$8 sps:$4 sm:$0xff]  }
  0x31   :  { %158 = vmatpush1.bf16.msra.mxu1 %v1255_v7  ;;  %189 = vmatprep.mubr.bf16.mxu1 %v1459_v0  ;;  %v1290_v30 = vld [vmem:[#allocation2 + $0x90] ss:$8 sps:$4 sm:$0xff]   ;;  %v1291_v31 = vld [vmem:[#allocation2 + $0xa4] ss:$8 sps:$4 sm:$0xff]   ;;  %v1293_v32 = vld [vmem:[#allocation2 + $0xa0] ss:$8 sps:$4 sm:$0xff]  }
  0x32   :  { %159 = vmatprep.subr.bf16.mxu1 %v1260_v12  ;;  %652 = vmatprep.subr.bf16.mxu0 %v1267_v14  ;;  %v1294_v33 = vld [vmem:[#allocation2 + $0xb4] ss:$8 sps:$4 sm:$0xff]   ;;  %v1296_v34 = vld [vmem:[#allocation2 + $0xb0] ss:$8 sps:$4 sm:$0xff]   ;;  %v1297_v35 = vld [vmem:[#allocation2 + $0xc4] ss:$8 sps:$4 sm:$0xff]  }
  0x33   :  { %v1299_v36 = vld [vmem:[#allocation2 + $0xc0] ss:$8 sps:$4 sm:$0xff]   ;;  %v1300_v37 = vld [vmem:[#allocation2 + $0xd4] ss:$8 sps:$4 sm:$0xff]   ;;  %v1302_v38 = vld [vmem:[#allocation2 + $0xd0] ss:$8 sps:$4 sm:$0xff]  }
  0x34   :  { %653 = vmatpush1.bf16.msra.mxu0 %v1269_v16  ;;  %v1303_v39 = vld [vmem:[#allocation2 + $0xe4] ss:$8 sps:$4 sm:$0xff]   ;;  %v1305_v40 = vld [vmem:[#allocation2 + $0xe0] ss:$8 sps:$4 sm:$0xff]   ;;  %v1306_v41 = vld [vmem:[#allocation2 + $0xf4] ss:$8 sps:$4 sm:$0xff]  }
  0x35   :  { %160 = vmatpush1.bf16.msra.mxu1 %v1258_v15  ;;  %654 = vmatprep.subr.bf16.mxu0 %v1270_v17  ;;  %v1308_v42 = vld [vmem:[#allocation2 + $0xf0] ss:$8 sps:$4 sm:$0xff]   ;;  %v1311_v43 = vld [vmem:[#allocation2 + $0x104] ss:$8 sps:$4 sm:$0xff]   ;;  %v1460_v56 = vmov 1966171168  }
  0x36   :  { %v1357_v44 = vld [vmem:[#allocation5 + $0x40] sm:$0xff]   ;;  %v1359_v46 = vld [vmem:[#allocation5 + $0x48] sm:$0xff]   ;;  %v1361_v48 = vld [vmem:[#allocation5 + $0x50] sm:$0xff]   ;;  %v213_v57 = vunpack.c.l.s4 %v1460_v56  ;;  %v1580_v4 = vsub.s32 0, %v216_v60  ;;  %vm1462_vm1 = vmmov 0   ;;  %s1463_s28 = smov [#allocation7]  }
  0x37   :  { %v1358_v45 = vld [vmem:[#allocation5] sm:$0xff]   ;;  %1183 = vmatprep.subr.bf16.mxu1 %v1357_v44  ;;  %v1360_v47 = vld [vmem:[#allocation5 + $0x8] sm:$0xff]   ;;  %v1362_v49 = vld [vmem:[#allocation5 + $0x10] sm:$0xff]   ;;  %s1072_s29 = sshll.u32 %s1463_s28, 4  ;;  %vm1064_vm2 = vcmask 130048   ;;  %s1073_s29 = int_to_ptr.vmem [resolvable:$true] %s1072_s29 }
  0x38   :  { %1091 = vmatmul.mubr.msk.bf16.vlgmr.msra.gmra.mrb[4].mxu1 %vm112_vm0, %v63_v8  ;;  %655 = vmatpush1.bf16.msra.mxu0 %v1272_v18  ;;  %v1363_v50 = vld [vmem:[#allocation5 + $0x58] sm:$0xff]   ;;  %v1365_v52 = vld [vmem:[#allocation5 + $0x60] sm:$0xff]   ;;  %v1367_v54 = vld [vmem:[#allocation5 + $0x68] sm:$0xff]   ;;  %v214_v59 = vunpack.c.0.s8 %v213_v57  ;;  %p1430_p3 = scmp.lt.s32.totalorder %s1073_s29, %s1073_s29 }
  0x39   :  { %656 = vmatprep.subr.bf16.mxu0 %v1273_v19  ;;  %1184 = vmatpush3.bf16.msra.mxu1 %v1358_v45  ;;  %v1364_v51 = vld [vmem:[#allocation5 + $0x18] sm:$0xff]   ;;  %v1366_v53 = vld [vmem:[#allocation5 + $0x20] sm:$0xff]   ;;  %v1368_v55 = vld [vmem:[#allocation5 + $0x28] sm:$0xff]  }
  0x3a   :  { %1185 = vmatprep.subr.bf16.mxu1 %v1359_v46  ;;  %v1092_v61 = vld.sshfl [vmem:[%s1651_s2] sm:$0x33 pattern:$0x75316420]  ;;  %v1572_v62 = vsub.s32 %v214_v59, %v216_v60  ;;  %v1338_v45 = vld [vmem:[#allocation2 + $0x194] ss:$8 sps:$4 sm:$0xff]  }
  0x3b   :  { %v211_v63 = vcombine.high %v1092_v61, %v1092_v61  ;;  %v1309_v19 = vld [vmem:[#allocation2 + $0x100] ss:$8 sps:$4 sm:$0xff]   ;;  %v1336_v46 = vld [vmem:[#allocation2 + $0x190] ss:$8 sps:$4 sm:$0xff]   ;;  %v1353_v57 = vld [vmem:[#allocation2 + $0x1e4] ss:$8 sps:$4 sm:$0xff]  }
  0x3c   :  { %657 = vmatpush1.bf16.msra.mxu0 %v1275_v20  ;;  %v1575_v1 = vrot.slane %v1092_v61, %v1572_v62  ;;  %v1333_v44 = vld [vmem:[#allocation2 + $0x180] ss:$8 sps:$4 sm:$0xff]   ;;  %v1356_v61 = vld [vmem:[#allocation2 + $0x1f4] ss:$8 sps:$4 sm:$0xff]  }
  0x3d   :  { %658 = vmatprep.subr.bf16.mxu0 %v1276_v21  ;;  %1186 = vmatpush3.bf16.msra.mxu1 %v1360_v47  ;;  %v225_v2 = vrot.slane %v211_v63, %v1572_v62  ;;  %v1314_v21 = vld [vmem:[#allocation2 + $0x114] ss:$8 sps:$4 sm:$0xff]   ;;  %v1341_v47 = vld [vmem:[#allocation2 + $0x1a4] ss:$8 sps:$4 sm:$0xff]   ;;  %v1351_v58 = vld [vmem:[#allocation2 + $0x1e0] ss:$8 sps:$4 sm:$0xff]  }
  0x3e   :  { %1187 = vmatprep.subr.bf16.mxu1 %v1361_v48  ;;  %v229_v3 = vpack.i.b16 %v1575_v1, %v1575_v1  ;;  %v1339_v48 = vld [vmem:[#allocation2 + $0x1a0] ss:$8 sps:$4 sm:$0xff]   ;;  %v1354_v63 = vld [vmem:[#allocation2 + $0x1f0] ss:$8 sps:$4 sm:$0xff]  }
  0x3f   :  { %v236_v5 = vpack.i.b16 %v225_v2, %v225_v2  ;;  %v227_v9 = vcombine.high %v225_v2, %v225_v2 }
  0x40   :  { %659 = vmatpush1.bf16.msra.mxu0 %v1278_v22  ;;  %v234_v6 = vrot.slane %v229_v3, %v1580_v4  ;;  %v1369_v3 = vld [vmem:[#allocation5 + $0x70] sm:$0xff]  }
  0x41   :  { %660 = vmatprep.subr.bf16.mxu0 %v1279_v23  ;;  %1188 = vmatpush3.bf16.msra.mxu1 %v1362_v49  ;;  %v241_v8 = vrot.slane %v236_v5, %v1580_v4  ;;  %v250_v17 = vpack.i.b16 %v227_v9, %v227_v9  ;;  %v1344_v49 = vld [vmem:[#allocation2 + $0x1b4] ss:$8 sps:$4 sm:$0xff]   ;;  %v1157_v9 = vld.sshfl [vmem:[%s1653_s4] sm:$0x11 pattern:$0x75316420] }
  0x42   :  { %1189 = vmatprep.subr.bf16.mxu1 %v1363_v50  ;;  %v1342_v50 = vld [vmem:[#allocation2 + $0x1b0] ss:$8 sps:$4 sm:$0xff]  }
  0x43   :  { %v255_v23 = vrot.slane %v250_v17, %v1580_v4  ;;  %v1370_v5 = vld [vmem:[#allocation5 + $0x30] sm:$0xff]  }
  0x44   :  { %661 = vmatpush1.bf16.msra.mxu0 %v1281_v24 }
  0x45   :  { %662 = vmatprep.subr.bf16.mxu0 %v1282_v25  ;;  %1190 = vmatpush3.bf16.msra.mxu1 %v1364_v51  ;;  %v1312_v25 = vld [vmem:[#allocation2 + $0x110] ss:$8 sps:$4 sm:$0xff]   ;;  %v1347_v51 = vld [vmem:[#allocation2 + $0x1c4] ss:$8 sps:$4 sm:$0xff]  }
  0x46   :  { %1191 = vmatprep.subr.bf16.mxu1 %v1365_v52  ;;  %v1345_v52 = vld [vmem:[#allocation2 + $0x1c0] ss:$8 sps:$4 sm:$0xff]  }
  0x48   :  { %663 = vmatpush1.bf16.msra.mxu0 %v1284_v26 }
  0x49   :  { %664 = vmatprep.subr.bf16.mxu0 %v1285_v27  ;;  %1192 = vmatpush3.bf16.msra.mxu1 %v1366_v53  ;;  %v226_v53 = vcombine.high %v1575_v1, %v1575_v1 }
  0x4a   :  { %1193 = vmatprep.subr.bf16.mxu1 %v1367_v54  ;;  %v1350_v54 = vld [vmem:[#allocation2 + $0x1d4] ss:$8 sps:$4 sm:$0xff]  }
  0x4b   :  { %v243_v56 = vpack.i.b16 %v226_v53, %v226_v53 }
  0x4c   :  { %665 = vmatpush1.bf16.msra.mxu0 %v1287_v28  ;;  %v1317_v28 = vld [vmem:[#allocation2 + $0x124] ss:$8 sps:$4 sm:$0xff]  }
  0x4d   :  { %666 = vmatprep.subr.bf16.mxu0 %v1288_v29  ;;  %1194 = vmatpush3.bf16.msra.mxu1 %v1368_v55  ;;  %v1348_v55 = vld [vmem:[#allocation2 + $0x1d0] ss:$8 sps:$4 sm:$0xff]   ;;  %v248_v60 = vrot.slane %v243_v56, %v1580_v4 }
  0x4e   :  { %1195 = vmatprep.subr.bf16.mxu1 %v1369_v3 }
  0x50   :  { %667 = vmatpush1.bf16.msra.mxu0 %v1290_v30 }
  0x51   :  { %668 = vmatprep.subr.bf16.mxu0 %v1291_v31  ;;  %v1315_v31 = vld [vmem:[#allocation2 + $0x120] ss:$8 sps:$4 sm:$0xff]   ;;  %1196 = vmatpush3.bf16.msra.mxu1 %v1370_v5 }
  0x54   :  { %669 = vmatpush1.bf16.msra.mxu0 %v1293_v32 }
  0x55   :  { %670 = vmatprep.subr.bf16.mxu0 %v1294_v33  ;;  %v1320_v33 = vld [vmem:[#allocation2 + $0x134] ss:$8 sps:$4 sm:$0xff]  }
  0x58   :  { %671 = vmatpush1.bf16.msra.mxu0 %v1296_v34  ;;  %v1318_v34 = vld [vmem:[#allocation2 + $0x130] ss:$8 sps:$4 sm:$0xff]  }
  0x59   :  { %672 = vmatprep.subr.bf16.mxu0 %v1297_v35  ;;  %v1323_v35 = vld [vmem:[#allocation2 + $0x144] ss:$8 sps:$4 sm:$0xff]  }
  0x5c   :  { %673 = vmatpush1.bf16.msra.mxu0 %v1299_v36  ;;  %v1321_v36 = vld [vmem:[#allocation2 + $0x140] ss:$8 sps:$4 sm:$0xff]  }
  0x5d   :  { %674 = vmatprep.subr.bf16.mxu0 %v1300_v37  ;;  %v1326_v37 = vld [vmem:[#allocation2 + $0x154] ss:$8 sps:$4 sm:$0xff]  }
  0x60   :  { %675 = vmatpush1.bf16.msra.mxu0 %v1302_v38  ;;  %v1324_v38 = vld [vmem:[#allocation2 + $0x150] ss:$8 sps:$4 sm:$0xff]  }
  0x61   :  { %676 = vmatprep.subr.bf16.mxu0 %v1303_v39  ;;  %v1329_v39 = vld [vmem:[#allocation2 + $0x164] ss:$8 sps:$4 sm:$0xff]  }
  0x64   :  { %677 = vmatpush1.bf16.msra.mxu0 %v1305_v40  ;;  %v1327_v40 = vld [vmem:[#allocation2 + $0x160] ss:$8 sps:$4 sm:$0xff]  }
  0x65   :  { %678 = vmatprep.subr.bf16.mxu0 %v1306_v41  ;;  %v1332_v41 = vld [vmem:[#allocation2 + $0x174] ss:$8 sps:$4 sm:$0xff]  }
  0x68   :  { %679 = vmatpush1.bf16.msra.mxu0 %v1308_v42  ;;  %v1330_v42 = vld [vmem:[#allocation2 + $0x170] ss:$8 sps:$4 sm:$0xff]  }
  0x69   :  { %689 = vmatprep.subr.bf16.mxu0 %v1311_v43  ;;  %v1335_v43 = vld [vmem:[#allocation2 + $0x184] ss:$8 sps:$4 sm:$0xff]  }
 0x103   :  { %v150_v7 = vpop.f32.mrb[0].mxu1 }
 0x104   :  { %v198_v10 = vpack.c.bf16 %v150_v7, %v150_v7  ;;  %v152_v11 = vpop.f32.mrb[1].mxu1  ;;  %v1372_v7 = vld [vmem:[#allocation5 + $0x38] sm:$0xff]  }
 0x105   :  { %v199_v12 = vpack.c.bf16 %v152_v11, %v152_v11  ;;  %v154_v13 = vpop.f32.mrb[2].mxu1  ;;  %v748_v11 = vrot.slane %v1157_v9, %v1572_v62 }
 0x106   :  { %v256_v14 = vadd.bf16 %v234_v6, %v198_v10  ;;  %v155_v15 = vpop.f32.mrb[3].mxu1  ;;  %v1371_v6 = vld [vmem:[#allocation5 + $0x78] sm:$0xff]   ;;  %v741_v10 = vcombine.high %v1157_v9, %v1157_v9 }
 0x107   :  { %v257_v16 = vadd.bf16 %v241_v8, %v199_v12  ;;  %1197 = vmatprep.subr.bf16.mxu1 %v1371_v6  ;;  %v1461_v8 = vmov 0.0   ;;  %v757_v13 = vpack.i.b16 %v748_v11, %v748_v11 }
 0x108   :  { %v260_v20 = vmax.bf16 %v1459_v0, %v256_v14  ;;  %1198 = vmatpush3.bf16.msra.mxu1 %v1372_v7  ;;  %v755_v12 = vrot.slane %v741_v10, %v1572_v62  ;;  %v1373_v62 = vld [vmem:[%s1656_s7] sm:$0xff]  }
 0x109   :  { %v261_v18 = vmax.bf16 %v1459_v0, %v257_v16  ;;  %1214 = vmatprep.subr.bf16.mxu1 %v1461_v8  ;;  %v762_v15 = vrot.slane %v757_v13, %v1580_v4 }
 0x10a   :  { %v764_v14 = vpack.i.b16 %v755_v12, %v755_v12 }
 0x10b   :  { %680 = vmatprep.mubr.bf16.mxu0 %v261_v18  ;;  %v1586_v22 = vpop.f32.mrb[4].mxu1 }
 0x10c   :  { %681 = vmatmul.mubr.bf16.vlgmr.msra.gmra.mrb[0].mxu0 %v260_v20  ;;  %v193_v24 = vpop.f32.mrb[5].mxu1  ;;  %v200_v59 = vpack.c.bf16 %v1586_v22, %v1586_v22  ;;  %v769_v17 = vrot.slane %v764_v14, %v1580_v4 }
 0x10d   :  { %690 = vmatpush1.bf16.msra.mxu0 %v1309_v19  ;;  %v201_v26 = vpack.c.bf16 %v193_v24, %v193_v24  ;;  %v195_v27 = vpop.f32.mrb[6].mxu1 }
 0x10e   :  { %691 = vmatprep.subr.bf16.mxu0 %v1314_v21  ;;  %v196_v29 = vpop.f32.mrb[7].mxu1  ;;  %v258_v2 = vadd.bf16 %v248_v60, %v200_v59  ;;  %v1374_v27 = vld [vmem:[%s1656_s7 + $0x8] sm:$0xff]  }
 0x10f   :  { %v259_v30 = vadd.bf16 %v255_v23, %v201_v26  ;;  %v1376_v29 = vld [vmem:[%s1656_s7 + $0x18] sm:$0xff]  }
 0x110   :  { %v262_v1 = vmax.bf16 %v1459_v0, %v258_v2 }
 0x111   :  { %692 = vmatpush1.bf16.msra.mxu0 %v1312_v25  ;;  %v263_v32 = vmax.bf16 %v1459_v0, %v259_v30  ;;  %v1377_v30 = vld [vmem:[%s1656_s7 + $0x20] sm:$0xff]  }
 0x112   :  { %693 = vmatprep.subr.bf16.mxu0 %v1317_v28  ;;  %v1375_v28 = vld [vmem:[%s1656_s7 + $0x10] sm:$0xff]  }
 0x113   :  { %721 = vmatprep.mubr.bf16.mxu0 %v263_v32  ;;  %v1379_v32 = vld [vmem:[%s1656_s7 + $0x30] sm:$0xff]  }
 0x115   :  { %694 = vmatpush1.bf16.msra.mxu0 %v1315_v31  ;;  %v1378_v31 = vld [vmem:[%s1656_s7 + $0x28] sm:$0xff]  }
 0x116   :  { %695 = vmatprep.subr.bf16.mxu0 %v1320_v33  ;;  %v1380_v33 = vld [vmem:[%s1656_s7 + $0x38] sm:$0xff]  }
 0x119   :  { %696 = vmatpush1.bf16.msra.mxu0 %v1318_v34  ;;  %v943_v34 = vld [vmem:[%s1655_s6] sm:$0x1]  ;;  %s1425_s6 = scalar_lea.vmem %s1073_s29, 128 }
 0x11a   :  { %697 = vmatprep.subr.bf16.mxu0 %v1323_v35  ;;  %v945_v35 = vpack.i.b16 %v943_v34, %v943_v34  ;;  %p1426_p2 = scmp.ne.s32.totalorder %s1073_s29, %s1425_s6  ;;  %p1431_p4 = scmp.lt.s32.totalorder %s1425_s6, %s1425_s6 }
 0x11c   :  { %p1432_p5 = por %p1431_p4, %p1430_p3 }
 0x11d   :  { %698 = vmatpush1.bf16.msra.mxu0 %v1321_v36 }
 0x11e   :  { %699 = vmatprep.subr.bf16.mxu0 %v1326_v37  ;;  %p1433_p6 = pnand %p1432_p5, %p1426_p2 }
 0x121   :  { %700 = vmatpush1.bf16.msra.mxu0 %v1324_v38 }
 0x122   :  { %701 = vmatprep.subr.bf16.mxu0 %v1329_v39  ;;  %v950_v39 = vrot.slane %v945_v35, %v1580_v4 }
 0x125   :  { %702 = vmatpush1.bf16.msra.mxu0 %v1327_v40 }
 0x126   :  { %703 = vmatprep.subr.bf16.mxu0 %v1332_v41 }
 0x129   :  { %704 = vmatpush1.bf16.msra.mxu0 %v1330_v42 }
 0x12a   :  { %705 = vmatprep.subr.bf16.mxu0 %v1335_v43 }
 0x12d   :  { %706 = vmatpush1.bf16.msra.mxu0 %v1333_v44 }
 0x12e   :  { %707 = vmatprep.subr.bf16.mxu0 %v1338_v45  ;;  %v1174_v45 = vld [vmem:[%s1657_s8] ss:$0 sm:$0xff] }
 0x131   :  { %708 = vmatpush1.bf16.msra.mxu0 %v1336_v46 }
 0x132   :  { %709 = vmatprep.subr.bf16.mxu0 %v1341_v47 }
 0x135   :  { %710 = vmatpush1.bf16.msra.mxu0 %v1339_v48 }
 0x136   :  { %711 = vmatprep.subr.bf16.mxu0 %v1344_v49 }
 0x139   :  { %712 = vmatpush1.bf16.msra.mxu0 %v1342_v50 }
 0x13a   :  { %713 = vmatprep.subr.bf16.mxu0 %v1347_v51 }
 0x13d   :  { %714 = vmatpush1.bf16.msra.mxu0 %v1345_v52 }
 0x13e   :  { %715 = vmatprep.subr.bf16.mxu0 %v1350_v54 }
 0x141   :  { %716 = vmatpush1.bf16.msra.mxu0 %v1348_v55 }
 0x142   :  { %717 = vmatprep.subr.bf16.mxu0 %v1353_v57 }
 0x145   :  { %718 = vmatpush1.bf16.msra.mxu0 %v1351_v58 }
 0x146   :  { %719 = vmatprep.subr.bf16.mxu0 %v1356_v61 }
 0x149   :  { %720 = vmatpush1.bf16.msra.mxu0 %v1354_v63 }
 0x14c   :  { %722 = vmatmul.mubr.bf16.vlgmr.msra.gmra.mrb[0].mxu0 %v262_v1 }
 0x21f   :  { %v723_v16 = vpop.f32.mrb[0].mxu0 }
 0x220   :  { %v730_v18 = vpack.c.bf16 %v723_v16, %v723_v16  ;;  %v725_v19 = vpop.f32.mrb[1].mxu0 }
 0x221   :  { %v731_v20 = vpack.c.bf16 %v725_v19, %v725_v19  ;;  %v727_v21 = vpop.f32.mrb[2].mxu0 }
 0x222   :  { %v770_v22 = vadd.bf16 %v762_v15, %v730_v18  ;;  %v728_v23 = vpop.f32.mrb[3].mxu0 }
 0x223   :  { %v771_v24 = vadd.bf16 %v769_v17, %v731_v20 }
 0x224   :  { %v772_v26 = vmax.bf16 %v1459_v0, %v770_v22 }
 0x225   :  { %v773_v25 = vmax.bf16 %v1459_v0, %v771_v24 }
 0x227   :  { %934 = vmatprep.mubr.bf16.mxu1 %v773_v25 }
 0x228   :  { %935 = vmatmul.mubr.bf16.vlgmr.msra.gmra.mrb[8].mxu1 %v772_v26 }
 0x229   :  { %1215 = vmatpush3.bf16.msra.mxu1 %v1373_v62  ;;  %1230 = vmatprep.mubr.msk.bf16.mxu1 %vm1462_vm1, %v1461_v8 }
 0x22a   :  { %1216 = vmatprep.subr.bf16.mxu1 %v1461_v8 }
 0x22d   :  { %1217 = vmatpush3.bf16.msra.mxu1 %v1374_v27 }
 0x22e   :  { %1218 = vmatprep.subr.bf16.mxu1 %v1461_v8 }
 0x231   :  { %1219 = vmatpush3.bf16.msra.mxu1 %v1375_v28 }
 0x232   :  { %1220 = vmatprep.subr.bf16.mxu1 %v1461_v8 }
 0x235   :  { %1221 = vmatpush3.bf16.msra.mxu1 %v1376_v29 }
 0x236   :  { %1222 = vmatprep.subr.bf16.mxu1 %v1461_v8 }
 0x239   :  { %1223 = vmatpush3.bf16.msra.mxu1 %v1377_v30 }
 0x23a   :  { %1224 = vmatprep.subr.bf16.mxu1 %v1461_v8 }
 0x23d   :  { %1225 = vmatpush3.bf16.msra.mxu1 %v1378_v31 }
 0x23e   :  { %1226 = vmatprep.subr.bf16.mxu1 %v1461_v8 }
 0x241   :  { %1227 = vmatpush3.bf16.msra.mxu1 %v1379_v32 }
 0x242   :  { %1228 = vmatprep.subr.bf16.mxu1 %v1461_v8 }
 0x245   :  { %1229 = vmatpush3.bf16.msra.mxu1 %v1380_v33 }
 0x2fb   :  { %v1199_v36 = vpop.f32.mrb[8].mxu1 }
 0x2fc   :  { %v1200_v37 = vpop.f32.mrb[9].mxu1 }
 0x2fd   :  { %v1201_v38 = vadd.f32 %v1200_v37, %v1199_v36  ;;  %v1202_v40 = vpop.f32.mrb[10].mxu1 }
 0x2fe   :  { %v1203_v41 = vpop.f32.mrb[11].mxu1 }
 0x2ff   :  { %v942_v42 = vpack.c.bf16 %v1201_v38, %v1201_v38 }
 0x301   :  { %v951_v43 = vadd.bf16 %v950_v39, %v942_v42 }
 0x303   :  { %v952_v44 = vmax.bf16 %v1459_v0, %v951_v43 }
 0x305   :  { %1231 = vmatmul.mubr.bf16.vlgmr.msra.gmra.mrb[12].mxu1 %v952_v44 }
 0x3d8   :  { %v1058_v46 = vpop.f32.mrb[12].mxu1 }
 0x3d9   :  { %v1059_v47 = vadd.f32 %v1174_v45, %v1058_v46  ;;  %v1232_v48 = vpop.f32.mrb[13].mxu1 }
 0x3da   :  { %v1061_v49 = vpop.f32.mrb[14].mxu1 }
 0x3db   :  { %v1233_v4 = vpop.f32.mrb[15].mxu1  ;;  %1065 = vst.msk [vmem:[#allocation7] sm:$0xff] %vm1064_vm2, %v1059_v47 }
 0x3dc   :  { %1436 = shalt.err (!%p1433_p6)
}
 0x3dd   :  { %s1437_s8 = scalar_lea.hbm %s1658_s9, 128 }
 0x3de   :  { %p1438_p7 = scmp.ne.s32.totalorder %s1658_s9, %s1437_s8  ;;  %p1441_p8 = scmp.lt.u32.totalorder %s1437_s8, %s1658_s9 }
 0x3e0   :  { %p1443_p9 = pnand %p1441_p8, %p1438_p7 }
 0x3e2   :  { %1446 = shalt.err (!%p1443_p9)
}
 0x3e3   :  { %1075 = dma.vmem_to_hbm [thread:$0]  %s1073_s29, 128, %s1658_s9, [#allocation4]  }
 0x3e4   :  { %1451 = dma.done.wait [#allocation4], 128  }
 0x3e5   :  { %1452 = vsyncadd [#allocation4], 4294967168 }
 0x3e6   :  { %1079 = vsyncpa [#allocation3], 1 }
 0x3e7   :  { %1080 = vsyncpa [#allocation6], 1 }
 0x3e8   :  { %1081 = vsyncpa [#allocation4], 1 }

</bundles_post_ra>
